<compile_context>
chip_gen: v6e
topology: v6e:2x2x1
jax: 0.10.0
libtpu: 0.0.40
codegen_flags: <defaults>
</compile_context>

<pallas_src>
import jax
import jax.numpy as jnp
from jax.experimental import pallas as pl
from jax.experimental.pallas import tpu as pltpu

BN_EPS = 1e-5


def _res_graph_conv_kernel(x_ref, adj_ref, w_ref, ep_ref, out_ref):
    """Fused _ResGraphConv forward.

    x_ref  : (B, N*C)   lane-dense input slab
    adj_ref: (N, N)
    w_ref  : (2, 2C, C) stacked fused weights, W_cat = concat([W_self, W_neigh], 0)
    ep_ref : (4, N, C)  stacked [scale1, shift1, scale2, shift2] (bias+BN folded)
    out_ref: (B, N*C)   lane-dense output slab
    """
    B = x_ref.shape[0]
    N = adj_ref.shape[0]
    C = x_ref.shape[1] // N

    x = x_ref[...].reshape(B, N, C)
    adj = adj_ref[...]

    def layer(h, w_cat, scale, shift):
        cin = h.shape[-1]
        dout = w_cat.shape[-1]
        # Neighbor aggregation: ONE (N, N) @ (N, B*cin) MXU matmul.
        h_t = jnp.transpose(h, (1, 0, 2)).reshape(N, B * cin)
        nh_t = jnp.dot(adj, h_t, preferred_element_type=jnp.float32)
        nh = jnp.transpose(nh_t.reshape(N, B, cin), (1, 0, 2))      # (B, N, cin)
        # Fused self + neighbor weight matmul (single dot, K = 2*cin).
        h_cat = jnp.concatenate([h, nh], axis=-1).reshape(B * N, 2 * cin)
        conv = jnp.dot(h_cat, w_cat, preferred_element_type=jnp.float32)
        conv = conv.reshape(B, N, dout)
        # Folded bias + eval-mode BatchNorm1d (node-axis channels) + ReLU.
        return jnp.maximum(conv * scale[None] + shift[None], 0.0)

    h1 = layer(x, w_ref[0], ep_ref[0], ep_ref[1])
    h2 = layer(h1, w_ref[1], ep_ref[2], ep_ref[3])
    out_ref[...] = (x + h2).reshape(B, N * C)


def _fold_layer_params(w_self, w_neigh, bias, gamma, beta, mean, var):
    """Host-side folding (f32): fused weight + BN/bias scale & shift."""
    w_cat = jnp.concatenate([w_self, w_neigh], axis=0)             # (2*Cin, D)
    b = bias.reshape(-1)                                            # (D,)
    g = gamma.reshape(-1)
    be = beta.reshape(-1)
    m = mean.reshape(-1)
    v = var.reshape(-1)
    s = g / jnp.sqrt(v + BN_EPS)                                    # (N,)
    n = s.shape[0]
    d = w_self.shape[1]
    scale = jnp.broadcast_to(s[:, None], (n, d)).astype(jnp.float32)        # (N, D)
    shift = (b[None, :] - m[:, None]) * s[:, None] + be[:, None]            # (N, D)
    return w_cat.astype(jnp.float32), scale, shift.astype(jnp.float32)


def res_graph_conv(x, adj, gconv1_params, gconv2_params):
    """Wrapper: lane-dense slabs, packed params, single-program pallas_call."""
    B, N, C = x.shape
    w1, s1, sh1 = _fold_layer_params(*gconv1_params)
    w2, s2, sh2 = _fold_layer_params(*gconv2_params)
    # Requires in_dim == hid_dim == out_dim (implied by residual + BN-over-nodes).
    w_slab = jnp.stack([w1, w2])                 # (2, 2C, C)
    ep_slab = jnp.stack([s1, sh1, s2, sh2])      # (4, N, C)
    x2d = x.reshape(B, N * C)                    # lane-dense (2, 256)

    vmem = pl.BlockSpec(memory_space=pltpu.MemorySpace.VMEM)
    out2d = pl.pallas_call(
        _res_graph_conv_kernel,
        out_shape=jax.ShapeDtypeStruct((B, N * C), x.dtype),
        in_specs=[vmem, vmem, vmem, vmem],
        out_specs=vmem,
    )(x2d, adj, w_slab, ep_slab)
    return out2d.reshape(B, N, C)


def reference(x, adj, gconv1_params, gconv2_params):
    """Pure-JAX reference matching the PyTorch forward (eval-mode BN)."""
    def block(h, params):
        ws, wn, b, gamma, beta, mean, var = params
        out = h @ ws + jnp.einsum('mn,bnc->bmc', adj, h) @ wn + b.reshape(1, 1, -1)
        out = (out - mean.reshape(1, -1, 1)) / jnp.sqrt(var.reshape(1, -1, 1) + BN_EPS)
        out = out * gamma.reshape(1, -1, 1) + beta.reshape(1, -1, 1)
        return jnp.maximum(out, 0.0)

    h1 = block(x, gconv1_params)
    h2 = block(h1, gconv2_params)
    return x + h2


if __name__ == "__main__":
    # Shapes consistent with the module's constraints:
    #   residual        -> input_dim == output_dim
    #   BN-over-nodes   -> num_nodes == hid_dim == output_dim
    B, N = 2, 16
    IN_DIM = HID_DIM = OUT_DIM = 16

    key = jax.random.PRNGKey(0)
    ks = jax.random.split(key, 20)

    # Deterministic skeleton adjacency: ring graph + self loops, row-normalized.
    eye = jnp.eye(N, dtype=jnp.float32)
    ring = jnp.roll(eye, 1, axis=1) + jnp.roll(eye, -1, axis=1)
    adj_raw = ring + eye
    adj = adj_raw / jnp.sum(adj_raw, axis=1, keepdims=True)

    def kaiming_like(k, shape):
        fan_in = shape[0]
        bound = jnp.sqrt(6.0 / fan_in)
        return jax.random.uniform(k, shape, jnp.float32, -bound, bound)

    # gconv1 params (EquivariantGraphConv + BatchNorm1d over node axis)
    w1s = kaiming_like(ks[0], (IN_DIM, HID_DIM))
    w1n = kaiming_like(ks[1], (IN_DIM, HID_DIM))
    b1 = jax.random.normal(ks[2], (HID_DIM,), jnp.float32) * 0.1
    g1 = jax.random.uniform(ks[3], (HID_DIM,), jnp.float32, 0.8, 1.2)
    be1 = jax.random.normal(ks[4], (HID_DIM,), jnp.float32) * 0.1
    m1 = jax.random.normal(ks[5], (HID_DIM,), jnp.float32) * 0.1
    v1 = jax.random.uniform(ks[6], (HID_DIM,), jnp.float32, 0.5, 1.5)

    # gconv2 params
    w2s = kaiming_like(ks[7], (HID_DIM, OUT_DIM))
    w2n = kaiming_like(ks[8], (HID_DIM, OUT_DIM))
    b2 = jax.random.normal(ks[9], (OUT_DIM,), jnp.float32) * 0.1
    g2 = jax.random.uniform(ks[10], (OUT_DIM,), jnp.float32, 0.8, 1.2)
    be2 = jax.random.normal(ks[11], (OUT_DIM,), jnp.float32) * 0.1
    m2 = jax.random.normal(ks[12], (OUT_DIM,), jnp.float32) * 0.1
    v2 = jax.random.uniform(ks[13], (OUT_DIM,), jnp.float32, 0.5, 1.5)

    gconv1_params = (w1s, w1n, b1, g1, be1, m1, v1)
    gconv2_params = (w2s, w2n, b2, g2, be2, m2, v2)

    x = jax.random.normal(ks[14], (B, N, IN_DIM), jnp.float32)

    out = res_graph_conv(x, adj, gconv1_params, gconv2_params)
    out = jax.block_until_ready(out)

    ref = reference(x, adj, gconv1_params, gconv2_params)
    assert out.shape == (B, N, OUT_DIM)
    assert jnp.allclose(out, ref, atol=1e-4, rtol=1e-4), (
        f"max abs err {jnp.max(jnp.abs(out - ref))}")

    print("KERNEL_OK")
</pallas_src>

<mosaic_0001>
module attributes {stable_mosaic.version = 11 : i64} {
  func.func @_res_graph_conv_kernel(%arg0: memref<2x256xf32, #tpu.memory_space<vmem>>, %arg1: memref<16x16xf32, #tpu.memory_space<vmem>>, %arg2: memref<2x32x16xf32, #tpu.memory_space<vmem>>, %arg3: memref<4x16x16xf32, #tpu.memory_space<vmem>>, %arg4: memref<2x256xf32, #tpu.memory_space<vmem>>) attributes {dimension_semantics = [], scalar_prefetch = 0 : i64, scratch_operands = 0 : i64, tpu.core_type = #tpu.core_type<tc>} {
    %c0 = arith.constant 0 : index
    %c0_0 = arith.constant 0 : index
    %0 = vector.load %arg0[%c0, %c0_0] : memref<2x256xf32, #tpu.memory_space<vmem>>, vector<2x256xf32>
    %1 = vector.shape_cast %0 : vector<2x256xf32> to vector<2x16x16xf32>
    %c0_1 = arith.constant 0 : index
    %c0_2 = arith.constant 0 : index
    %2 = vector.load %arg1[%c0_1, %c0_2] : memref<16x16xf32, #tpu.memory_space<vmem>>, vector<16x16xf32>
    %c0_3 = arith.constant 0 : index
    %c0_4 = arith.constant 0 : index
    %c0_5 = arith.constant 0 : index
    %3 = vector.load %arg2[%c0_3, %c0_4, %c0_5] : memref<2x32x16xf32, #tpu.memory_space<vmem>>, vector<1x32x16xf32>
    %4 = vector.shape_cast %3 : vector<1x32x16xf32> to vector<32x16xf32>
    %c0_6 = arith.constant 0 : index
    %c0_7 = arith.constant 0 : index
    %c0_8 = arith.constant 0 : index
    %5 = vector.load %arg3[%c0_6, %c0_7, %c0_8] : memref<4x16x16xf32, #tpu.memory_space<vmem>>, vector<1x16x16xf32>
    %6 = vector.shape_cast %5 : vector<1x16x16xf32> to vector<16x16xf32>
    %c1 = arith.constant 1 : index
    %c0_9 = arith.constant 0 : index
    %c0_10 = arith.constant 0 : index
    %7 = vector.load %arg3[%c1, %c0_9, %c0_10] : memref<4x16x16xf32, #tpu.memory_space<vmem>>, vector<1x16x16xf32>
    %8 = vector.shape_cast %7 : vector<1x16x16xf32> to vector<16x16xf32>
    %9 = tpu.transpose %1, [1, 0, 2] : vector<2x16x16xf32> -> vector<16x2x16xf32>
    %10 = vector.shape_cast %9 : vector<16x2x16xf32> to vector<16x32xf32>
    %cst = arith.constant dense<0.000000e+00> : vector<16x32xf32>
    %11 = tpu.matmul %2, %10, %cst {dimension_numbers = #tpu.dot_dimension_numbers<[1], [0], [0], [1], [0, 0, 1, 1], [], []>} : vector<16x16xf32>, vector<16x32xf32>, vector<16x32xf32> -> vector<16x32xf32>
    %12 = vector.shape_cast %11 : vector<16x32xf32> to vector<16x2x16xf32>
    %13 = tpu.transpose %12, [1, 0, 2] : vector<16x2x16xf32> -> vector<2x16x16xf32>
    %14 = tpu.concatenate %1, %13 in 2 : vector<2x16x16xf32>, vector<2x16x16xf32> -> vector<2x16x32xf32>
    %15 = vector.shape_cast %14 : vector<2x16x32xf32> to vector<32x32xf32>
    %cst_11 = arith.constant dense<0.000000e+00> : vector<32x16xf32>
    %16 = tpu.matmul %15, %4, %cst_11 {dimension_numbers = #tpu.dot_dimension_numbers<[1], [0], [0], [1], [0, 0, 1, 1], [], []>} : vector<32x32xf32>, vector<32x16xf32>, vector<32x16xf32> -> vector<32x16xf32>
    %17 = vector.shape_cast %16 : vector<32x16xf32> to vector<2x16x16xf32>
    %18 = vector.shape_cast %6 : vector<16x16xf32> to vector<1x16x16xf32>
    %19 = vector.broadcast %18 : vector<1x16x16xf32> to vector<2x16x16xf32>
    %20 = arith.mulf %17, %19 : vector<2x16x16xf32>
    %21 = vector.shape_cast %8 : vector<16x16xf32> to vector<1x16x16xf32>
    %22 = vector.broadcast %21 : vector<1x16x16xf32> to vector<2x16x16xf32>
    %23 = arith.addf %20, %22 : vector<2x16x16xf32>
    %cst_12 = arith.constant 0.000000e+00 : f32
    %24 = vector.broadcast %cst_12 : f32 to vector<2x16x16xf32>
    %25 = arith.maximumf %23, %24 : vector<2x16x16xf32>
    %c1_13 = arith.constant 1 : index
    %c0_14 = arith.constant 0 : index
    %c0_15 = arith.constant 0 : index
    %26 = vector.load %arg2[%c1_13, %c0_14, %c0_15] : memref<2x32x16xf32, #tpu.memory_space<vmem>>, vector<1x32x16xf32>
    %27 = vector.shape_cast %26 : vector<1x32x16xf32> to vector<32x16xf32>
    %c2 = arith.constant 2 : index
    %c0_16 = arith.constant 0 : index
    %c0_17 = arith.constant 0 : index
    %28 = vector.load %arg3[%c2, %c0_16, %c0_17] : memref<4x16x16xf32, #tpu.memory_space<vmem>>, vector<1x16x16xf32>
    %29 = vector.shape_cast %28 : vector<1x16x16xf32> to vector<16x16xf32>
    %c3 = arith.constant 3 : index
    %c0_18 = arith.constant 0 : index
    %c0_19 = arith.constant 0 : index
    %30 = vector.load %arg3[%c3, %c0_18, %c0_19] : memref<4x16x16xf32, #tpu.memory_space<vmem>>, vector<1x16x16xf32>
    %31 = vector.shape_cast %30 : vector<1x16x16xf32> to vector<16x16xf32>
    %32 = tpu.transpose %25, [1, 0, 2] : vector<2x16x16xf32> -> vector<16x2x16xf32>
    %33 = vector.shape_cast %32 : vector<16x2x16xf32> to vector<16x32xf32>
    %cst_20 = arith.constant dense<0.000000e+00> : vector<16x32xf32>
    %34 = tpu.matmul %2, %33, %cst_20 {dimension_numbers = #tpu.dot_dimension_numbers<[1], [0], [0], [1], [0, 0, 1, 1], [], []>} : vector<16x16xf32>, vector<16x32xf32>, vector<16x32xf32> -> vector<16x32xf32>
    %35 = vector.shape_cast %34 : vector<16x32xf32> to vector<16x2x16xf32>
    %36 = tpu.transpose %35, [1, 0, 2] : vector<16x2x16xf32> -> vector<2x16x16xf32>
    %37 = tpu.concatenate %25, %36 in 2 : vector<2x16x16xf32>, vector<2x16x16xf32> -> vector<2x16x32xf32>
    %38 = vector.shape_cast %37 : vector<2x16x32xf32> to vector<32x32xf32>
    %cst_21 = arith.constant dense<0.000000e+00> : vector<32x16xf32>
    %39 = tpu.matmul %38, %27, %cst_21 {dimension_numbers = #tpu.dot_dimension_numbers<[1], [0], [0], [1], [0, 0, 1, 1], [], []>} : vector<32x32xf32>, vector<32x16xf32>, vector<32x16xf32> -> vector<32x16xf32>
    %40 = vector.shape_cast %39 : vector<32x16xf32> to vector<2x16x16xf32>
    %41 = vector.shape_cast %29 : vector<16x16xf32> to vector<1x16x16xf32>
    %42 = vector.broadcast %41 : vector<1x16x16xf32> to vector<2x16x16xf32>
    %43 = arith.mulf %40, %42 : vector<2x16x16xf32>
    %44 = vector.shape_cast %31 : vector<16x16xf32> to vector<1x16x16xf32>
    %45 = vector.broadcast %44 : vector<1x16x16xf32> to vector<2x16x16xf32>
    %46 = arith.addf %43, %45 : vector<2x16x16xf32>
    %cst_22 = arith.constant 0.000000e+00 : f32
    %47 = vector.broadcast %cst_22 : f32 to vector<2x16x16xf32>
    %48 = arith.maximumf %46, %47 : vector<2x16x16xf32>
    %49 = arith.addf %1, %48 : vector<2x16x16xf32>
    %50 = vector.shape_cast %49 : vector<2x16x16xf32> to vector<2x256xf32>
    %c0_23 = arith.constant 0 : index
    %c0_24 = arith.constant 0 : index
    %51 = vector.load %arg4[%c0_23, %c0_24] : memref<2x256xf32, #tpu.memory_space<vmem>>, vector<2x256xf32>
    tpu.vector_store %arg4[%c0_23, %c0_24], %50 {strides = array<i32>} : memref<2x256xf32, #tpu.memory_space<vmem>>, vector<2x256xf32>,
    return
  }
}

</mosaic_0001>

<bundles_post_ra>
// kernel: tpu_custom_call.1
= control target key start
LH: loop header
LB: loop body
LE: loop exit
PB: predicated region body
PF: predicated region fallthrough
CT: control target
= control target key end

     0   :  { %s2132_s17 = smov 112   ;;  %s2133_s18 = smov 80   ;;  %s2611_s0 = inlined_call_operand.vmem [shape: f32[2,256], index: 0, kind: input, shape index: {}]   ;;  %s2612_s1 = inlined_call_operand.vmem [shape: f32[16,16], index: 1, kind: input, shape index: {}]   ;;  %s2613_s2 = inlined_call_operand.vmem [shape: f32[2,32,16], index: 2, kind: input, shape index: {}]   ;;  %s2614_s3 = inlined_call_operand.vmem [shape: f32[4,16,16], index: 3, kind: input, shape index: {}]   ;;  %s2615_s4 = inlined_call_operand.hbm [shape: f32[2,256], index: 4, kind: output, shape index: {}]  }
   0x1   :  { %v18_v0 = vld [vmem:[%s2611_s0] sm:$0xf] }
   0x2   :  { %22 = vrot.lane.b32.xlu0 %v18_v0, %s2132_s17  ;;  %30 = vrot.lane.b32.xlu1 %v18_v0, %s2133_s18 }
   0x3   :  { %9 = vsyncpa [#allocation3], 0  ;;  %s2134_s19 = smov 96   ;;  %s2135_s20 = smov 64   ;;  %v2139_v1 = vmov 1934713408   ;;  %v61_v3 = vlaneseq }
   0x4   :  { %s2136_s21 = smov 48   ;;  %s2137_s22 = smov 32   ;;  %v59_v2 = vunpack.c.l.s4 %v2139_v1  ;;  %v20_v7 = vrot.slane %v18_v0, 2  ;;  %v2140_v17 = vmov 0.0   ;;  %vm376_vm0 = vcmask 130048  }
   0x5   :  { %s2138_s0 = smov 16   ;;  %v2178_v5 = vshrl.u32 %v61_v3, 7  ;;  %vm808_vm1 = vcmask 261120   ;;  %vm1947_vm2 = vcmask 392192   ;;  %vm1949_vm3 = vcmask 523264  }
   0x6   :  { %26 = vrot.lane.b32.xlu0 %v18_v0, %s2134_s19  ;;  %34 = vrot.lane.b32.xlu1 %v18_v0, %s2135_s20  ;;  %v60_v4 = vunpack.c.0.s8 %v59_v2  ;;  %vm1951_vm4 = vcmask 654336   ;;  %vm1953_vm5 = vcmask 785408   ;;  %vm1955_vm6 = vcmask 916480  }
   0x8   :  { %v2181_v6 = vsub.s32 %v60_v4, %v2178_v5 }
   0xa   :  { %38 = vrot.lane.b32.xlu0 %v18_v0, %s2136_s21  ;;  %42 = vrot.lane.b32.xlu1 %v18_v0, %s2137_s22 }
   0xe   :  { %46 = vrot.lane.b32.xlu0 %v18_v0, %s2138_s0 }
  0x74   :  { %v23_v8 = vpop.permute.xlu0 %22  ;;  %v31_v9 = vpop.permute.xlu1 %30 }
  0x75   :  { %v24_v10 = vrot.slane %v23_v8, 2  ;;  %v57_v11 = vcombine.low %v18_v0, %v23_v8  ;;  %v32_v14 = vrot.slane %v31_v9, 2  ;;  %v2141_v8 = vmov 1983009808  }
  0x77   :  { %v2184_v12 = vrot.slane %v57_v11, %v2181_v6  ;;  %v93_v13 = vcombine.low %v20_v7, %v24_v10 }
  0x78   :  { %v27_v15 = vpop.permute.xlu0 %26  ;;  %v35_v16 = vpop.permute.xlu1 %34 }
  0x79   :  { %v2188_v18 = vcombine.high %v2184_v12, %v2140_v17  ;;  %v2191_v19 = vrot.slane %v93_v13, %v2181_v6  ;;  %v28_v20 = vrot.slane %v27_v15, 2  ;;  %v66_v21 = vcombine.low %v27_v15, %v31_v9 }
  0x7a   :  { %v36_v22 = vrot.slane %v35_v16, 2  ;;  %v295_v9 = vunpack.c.l.s4 %v2141_v8  ;;  %v2302_v8 = vld [vmem:[%s2612_s1 + $0x8] sm:$0xff] }
  0x7b   :  { %v2194_v23 = vrot.slane %v66_v21, %v2181_v6  ;;  %v102_v24 = vcombine.low %v28_v20, %v32_v14  ;;  %v140_v25 = vcombine.low %v2184_v12, %v2188_v18  ;;  %v2200_v26 = vcombine.high %v2191_v19, %v2140_v17 }
  0x7c   :  { %v39_v27 = vpop.permute.xlu0 %38  ;;  %v43_v28 = vpop.permute.xlu1 %42 }
  0x7d   :  { %v2204_v29 = vcombine.high %v2194_v23, %v2140_v17  ;;  %v2207_v30 = vrot.slane %v102_v24, %v2181_v6  ;;  %v40_v31 = vrot.slane %v39_v27, 2  ;;  %v75_v32 = vcombine.low %v35_v16, %v39_v27 }
  0x7e   :  { %v44_v33 = vrot.slane %v43_v28, 2  ;;  %v147_v34 = vrot.slane %v140_v25, %v2181_v6  ;;  %v176_v35 = vcombine.low %v2191_v19, %v2200_v26  ;;  %v296_v25 = vunpack.c.0.s8 %v295_v9 }
  0x7f   :  { %v2213_v36 = vrot.slane %v75_v32, %v2181_v6  ;;  %v111_v37 = vcombine.low %v36_v22, %v40_v31  ;;  %v149_v38 = vcombine.low %v2194_v23, %v2204_v29  ;;  %v2219_v39 = vcombine.high %v2207_v30, %v2140_v17 }
  0x80   :  { %v47_v40 = vpop.permute.xlu0 %46  ;;  %v148_v41 = vcombine.high %v147_v34, %v2140_v17  ;;  %v183_v42 = vrot.slane %v176_v35, %v2181_v6 }
  0x81   :  { %v2225_v43 = vcombine.high %v2213_v36, %v2140_v17  ;;  %v2228_v44 = vrot.slane %v111_v37, %v2181_v6  ;;  %v48_v45 = vrot.slane %v47_v40, 2  ;;  %v84_v46 = vcombine.low %v43_v28, %v47_v40 }
  0x82   :  { %v156_v47 = vrot.slane %v149_v38, %v2181_v6  ;;  %v184_v48 = vcombine.high %v183_v42, %v2140_v17  ;;  %v185_v49 = vcombine.low %v2207_v30, %v2219_v39  ;;  %v212_v55 = vcombine.low %v147_v34, %v148_v41  ;;  %v129_v41 = vld [vmem:[%s2612_s1] sm:$0xff] }
  0x83   :  { %v2235_v50 = vrot.slane %v84_v46, %v2181_v6  ;;  %v120_v51 = vcombine.low %v44_v33, %v48_v45  ;;  %v158_v52 = vcombine.low %v2213_v36, %v2225_v43  ;;  %v2241_v53 = vcombine.high %v2228_v44, %v2140_v17  ;;  %2061 = vmatprep.mubr.msk.f32.mxu1 %vm376_vm0, %v129_v41 }
  0x84   :  { %v157_v54 = vcombine.high %v156_v47, %v2140_v17  ;;  %v192_v56 = vrot.slane %v185_v49, %v2181_v6  ;;  %v248_v63 = vcombine.low %v183_v42, %v184_v48  ;;  %v219_v4 = vrot.slane %v212_v55, %v2181_v6  ;;  %2082 = vmatprep.mubr.msk.f32.mxu0 %vm376_vm0, %v129_v41 }
  0x85   :  { %v2247_v57 = vcombine.high %v2235_v50, %v2140_v17  ;;  %v2250_v58 = vrot.slane %v120_v51, %v2181_v6  ;;  %v165_v59 = vrot.slane %v158_v52, %v2181_v6  ;;  %v194_v60 = vcombine.low %v2228_v44, %v2241_v53 }
  0x86   :  { %v221_v61 = vcombine.low %v156_v47, %v157_v54  ;;  %v193_v62 = vcombine.high %v192_v56, %v2140_v17  ;;  %v255_v15 = vrot.slane %v248_v63, %v2181_v6  ;;  %v2278_v38 = vsub.s32 %v296_v25, %v2178_v5 }
  0x87   :  { %v166_v0 = vcombine.high %v165_v59, %v2140_v17  ;;  %v167_v1 = vcombine.low %v2235_v50, %v2247_v57  ;;  %v2261_v2 = vcombine.high %v2250_v58, %v2140_v17  ;;  %v201_v3 = vrot.slane %v194_v60, %v2181_v6 }
  0x88   :  { %v228_v7 = vrot.slane %v221_v61, %v2181_v6  ;;  %v257_v10 = vcombine.low %v192_v56, %v193_v62 }
  0x89   :  { %v174_v11 = vrot.slane %v167_v1, %v2181_v6  ;;  %v202_v13 = vcombine.high %v201_v3, %v2140_v17  ;;  %v203_v14 = vcombine.low %v2250_v58, %v2261_v2  ;;  %v230_v22 = vcombine.low %v165_v59, %v166_v0 }
  0x8a   :  { %v264_v16 = vrot.slane %v257_v10, %v2181_v6  ;;  %v292_v20 = vcombine.low %v219_v4, %v228_v7  ;;  %v1992_v33 = vcombine.high %v219_v4, %v228_v7 }
  0x8b   :  { %v175_v21 = vcombine.high %v174_v11, %v2140_v17  ;;  %v210_v24 = vrot.slane %v203_v14, %v2181_v6  ;;  %v266_v32 = vcombine.low %v201_v3, %v202_v13  ;;  %v237_v34 = vrot.slane %v230_v22, %v2181_v6  ;;  %v133_v13 = vld [vmem:[%s2613_s2 + $0x10] sm:$0xff] }
  0x8c   :  { %v309_v27 = vcombine.low %v255_v15, %v264_v16  ;;  %v1994_v40 = vcombine.high %v255_v15, %v264_v16  ;;  %v344_v48 = vrot.slane %v1992_v33, %v2278_v38  ;;  %v300_v49 = vrot.slane %v292_v20, %v2278_v38 }
  0x8d   :  { %v239_v28 = vcombine.low %v174_v11, %v175_v21  ;;  %v211_v31 = vcombine.high %v210_v24, %v2140_v17  ;;  %v273_v45 = vrot.slane %v266_v32, %v2181_v6  ;;  %v134_v11 = vld [vmem:[%s2613_s2 + $0x18] sm:$0xff] }
  0x8e   :  { %v361_v55 = vrot.slane %v1994_v40, %v2278_v38  ;;  %v317_v56 = vrot.slane %v309_v27, %v2278_v38 }
  0x8f   :  { %v246_v35 = vrot.slane %v239_v28, %v2181_v6  ;;  %v275_v37 = vcombine.low %v210_v24, %v211_v31 }
  0x91   :  { %v1993_v42 = vcombine.high %v237_v34, %v246_v35  ;;  %v282_v46 = vrot.slane %v275_v37, %v2181_v6  ;;  %v293_v47 = vcombine.low %v237_v34, %v246_v35 }
  0x93   :  { %v351_v5 = vrot.slane %v1993_v42, %v2278_v38  ;;  %v1995_v51 = vcombine.high %v273_v45, %v282_v46  ;;  %v310_v52 = vcombine.low %v273_v45, %v282_v46  ;;  %v307_v54 = vrot.slane %v293_v47, %v2278_v38 }
  0x95   :  { %v352_v59 = vcombine.low %v344_v48, %v351_v5  ;;  %v368_v60 = vrot.slane %v1995_v51, %v2278_v38  ;;  %v324_v61 = vrot.slane %v310_v52, %v2278_v38  ;;  %v308_v62 = vcombine.low %v300_v49, %v307_v54  ;;  %v132_v48 = vld [vmem:[%s2613_s2 + $0x8] sm:$0xff] }
  0x97   :  { %370 = vrot.lane.b32.xlu0 %v352_v59, %s2138_s0  ;;  %v369_v63 = vcombine.low %v361_v55, %v368_v60  ;;  %v325_v0 = vcombine.low %v317_v56, %v324_v61 }
  0x99   :  { %372 = vrot.lane.b32.xlu1 %v369_v63, %s2138_s0 }
 0x109   :  { %v371_v1 = vpop.permute.xlu0 %370 }
 0x10a   :  { %v377_v7 = vsel %vm376_vm0, %v308_v62, %v371_v1 }
 0x10b   :  { %v373_v3 = vpop.permute.xlu1 %372 }
 0x10c   :  { %v378_v4 = vsel %vm376_vm0, %v325_v0, %v373_v3  ;;  %v131_v0 = vld [vmem:[%s2613_s2] sm:$0xff] }
 0x10d   :  { %2057 = vmatprep.subr.mxu1 %v378_v4 }
 0x10e   :  { %2058 = vmatpush3.msra.mxu1 %v378_v4 }
 0x10f   :  { %2059 = vmatprep.subr.mxu1 %v377_v7 }
 0x110   :  { %2060 = vmatpush3.msra.mxu1 %v377_v7 }
 0x111   :  { %2062 = vmatmul.mubr.msk.f32.vlgmr.msra.gmra.mxu1 %vm376_vm0, %v2302_v8  ;;  %2064 = vmatprep.subr.mxu1 %v134_v11 }
 0x112   :  { %2065 = vmatpush3.msra.mxu1 %v134_v11 }
 0x113   :  { %2066 = vmatprep.subr.mxu1 %v133_v13 }
 0x114   :  { %2067 = vmatpush3.msra.mxu1 %v133_v13 }
 0x115   :  { %2068 = vmatprep.subr.mxu1 %v132_v48 }
 0x116   :  { %2069 = vmatpush3.msra.mxu1 %v132_v48 }
 0x117   :  { %2070 = vmatprep.subr.mxu1 %v131_v0 }
 0x118   :  { %2071 = vmatpush3.msra.mxu1 %v131_v0 }
 0x1d1   :  { %v2063_v9 = vpop.f32.mrf.mxu1 }
 0x1d2   :  { %464 = vrot.lane.b32.xlu0 %v2063_v9, %s2132_s17  ;;  %v534_v14 = vcombine.high %v2063_v9, %v2140_v17  ;;  %v541_v16 = vrot.slane %v2063_v9, %v2278_v38 }
 0x1d3   :  { %v451_v10 = vpop.f32.mrf.mxu1 }
 0x1d4   :  { %462 = vrot.lane.b32.xlu1 %v451_v10, %s2132_s17  ;;  %v548_v22 = vrot.slane %v534_v14, %v2278_v38  ;;  %v468_v24 = vcombine.high %v451_v10, %v2140_v17  ;;  %v475_v33 = vrot.slane %v451_v10, %v2278_v38 }
 0x1d6   :  { %v482_v42 = vrot.slane %v468_v24, %v2278_v38 }
 0x244   :  { %v465_v15 = vpop.permute.xlu0 %464 }
 0x245   :  { %v549_v20 = vcombine.high %v465_v15, %v2140_v17  ;;  %v556_v21 = vrot.slane %v465_v15, %v2278_v38 }
 0x246   :  { %v463_v25 = vpop.permute.xlu1 %462 }
 0x247   :  { %v563_v27 = vrot.slane %v549_v20, %v2278_v38  ;;  %v564_v28 = vcombine.low %v541_v16, %v556_v21  ;;  %v565_v31 = vcombine.high %v541_v16, %v556_v21  ;;  %v483_v32 = vcombine.high %v463_v25, %v2140_v17 }
 0x248   :  { %v490_v34 = vrot.slane %v463_v25, %v2278_v38 }
 0x249   :  { %v572_v35 = vrot.slane %v564_v28, %v2181_v6  ;;  %v579_v37 = vrot.slane %v565_v31, %v2181_v6  ;;  %v580_v40 = vcombine.low %v548_v22, %v563_v27  ;;  %v581_v41 = vcombine.high %v548_v22, %v563_v27 }
 0x24a   :  { %v497_v45 = vrot.slane %v483_v32, %v2278_v38  ;;  %v498_v46 = vcombine.low %v475_v33, %v490_v34  ;;  %v499_v47 = vcombine.high %v475_v33, %v490_v34 }
 0x24b   :  { %v588_v49 = vrot.slane %v580_v40, %v2181_v6  ;;  %v595_v5 = vrot.slane %v581_v41, %v2181_v6  ;;  %v650_v51 = vcombine.low %v572_v35, %v579_v37  ;;  %v2000_v52 = vcombine.high %v572_v35, %v579_v37 }
 0x24c   :  { %v506_v54 = vrot.slane %v498_v46, %v2181_v6  ;;  %v513_v55 = vrot.slane %v499_v47, %v2181_v6  ;;  %v514_v56 = vcombine.low %v482_v42, %v497_v45  ;;  %v515_v59 = vcombine.high %v482_v42, %v497_v45 }
 0x24d   :  { %v657_v60 = vrot.slane %v650_v51, %v2278_v38  ;;  %v665_v61 = vrot.slane %v2000_v52, %v2278_v38  ;;  %v666_v62 = vcombine.low %v588_v49, %v595_v5  ;;  %v2001_v63 = vcombine.high %v588_v49, %v595_v5 }
 0x24e   :  { %v522_v1 = vrot.slane %v514_v56, %v2181_v6  ;;  %v529_v3 = vrot.slane %v515_v59, %v2181_v6  ;;  %v600_v4 = vcombine.low %v506_v54, %v513_v55  ;;  %v1998_v7 = vcombine.high %v506_v54, %v513_v55 }
 0x24f   :  { %v673_v9 = vrot.slane %v666_v62, %v2278_v38  ;;  %v681_v10 = vrot.slane %v2001_v63, %v2278_v38  ;;  %v682_v11 = vcombine.low %v657_v60, %v665_v61  ;;  %v717_v40 = vcombine.low %v2213_v36, %v2235_v50 }
 0x250   :  { %v607_v13 = vrot.slane %v600_v4, %v2278_v38  ;;  %v615_v14 = vrot.slane %v1998_v7, %v2278_v38  ;;  %v616_v15 = vcombine.low %v522_v1, %v529_v3  ;;  %v1999_v16 = vcombine.high %v522_v1, %v529_v3 }
 0x251   :  { %v690_v20 = vcombine.low %v673_v9, %v681_v10  ;;  %v689_v25 = vrot.slane %v682_v11, %v2181_v6  ;;  %v734_v41 = vcombine.low %v2228_v44, %v2250_v58  ;;  %v716_v42 = vcombine.low %v2184_v12, %v2194_v23 }
 0x252   :  { %v623_v21 = vrot.slane %v616_v15, %v2278_v38  ;;  %v631_v22 = vrot.slane %v1999_v16, %v2278_v38  ;;  %v632_v24 = vcombine.low %v607_v13, %v615_v14  ;;  %v733_v45 = vcombine.low %v2191_v19, %v2207_v30  ;;  %v136_v14 = vld [vmem:[%s2614_s3 + $0x8] sm:$0xff]  ;;  %v1991_v15 = vld [vmem:[%s2614_s3 + $0x18] sm:$0xff] }
 0x253   :  { %v697_v27 = vrot.slane %v690_v20, %v2181_v6  ;;  %v731_v46 = vrot.slane %v717_v40, %v2278_v38  ;;  %v2003_v47 = vcombine.high %v2213_v36, %v2235_v50  ;;  %v748_v48 = vrot.slane %v734_v41, %v2278_v38  ;;  %v135_v20 = vld [vmem:[%s2614_s3] sm:$0xff] }
 0x254   :  { %v640_v28 = vcombine.low %v623_v21, %v631_v22  ;;  %v639_v32 = vrot.slane %v632_v24, %v2181_v6  ;;  %v2005_v49 = vcombine.high %v2228_v44, %v2250_v58  ;;  %v724_v51 = vrot.slane %v716_v42, %v2278_v38  ;;  %v1990_v22 = vld [vmem:[%s2614_s3 + $0x10] sm:$0xff] }
 0x255   :  { %v698_v31 = vcombine.low %v689_v25, %v697_v27  ;;  %v699_v35 = vcombine.high %v689_v25, %v697_v27  ;;  %v2002_v52 = vcombine.high %v2184_v12, %v2194_v23  ;;  %v741_v54 = vrot.slane %v733_v45, %v2278_v38 }
 0x256   :  { %v647_v33 = vrot.slane %v640_v28, %v2181_v6  ;;  %v2004_v55 = vcombine.high %v2191_v19, %v2207_v30  ;;  %v732_v56 = vcombine.low %v724_v51, %v731_v46  ;;  %v765_v59 = vrot.slane %v2003_v47, %v2278_v38 }
 0x257   :  { %794 = vrot.lane.b32.xlu0 %v698_v31, %s2138_s0  ;;  %v749_v60 = vcombine.low %v741_v54, %v748_v48  ;;  %v782_v62 = vrot.slane %v2005_v49, %v2278_v38  ;;  %v758_v0 = vrot.slane %v2002_v52, %v2278_v38 }
 0x258   :  { %v648_v34 = vcombine.low %v639_v32, %v647_v33  ;;  %v649_v37 = vcombine.high %v639_v32, %v647_v33  ;;  %v775_v3 = vrot.slane %v2004_v55, %v2278_v38 }
 0x259   :  { %v766_v7 = vcombine.low %v758_v0, %v765_v59 }
 0x25a   :  { %792 = vrot.lane.b32.xlu1 %v648_v34, %s2138_s0  ;;  %v783_v9 = vcombine.low %v775_v3, %v782_v62 }
 0x25b   :  { %798 = vrot.lane.b32.xlu0 %v699_v35, %s2138_s0 }
 0x25e   :  { %796 = vrot.lane.b32.xlu1 %v649_v37, %s2138_s0 }
 0x2c9   :  { %v795_v5 = vpop.permute.xlu0 %794 }
 0x2ca   :  { %v805_v1 = vsel %vm376_vm0, %v749_v60, %v795_v5 }
 0x2cc   :  { %v793_v61 = vpop.permute.xlu1 %792 }
 0x2cd   :  { %v804_v63 = vsel %vm376_vm0, %v732_v56, %v793_v61  ;;  %v799_v4 = vpop.permute.xlu0 %798 }
 0x2ce   :  { %2072 = vmatprep.mubr.msk.f32.mxu1 %vm808_vm1, %v804_v63  ;;  %v807_v13 = vsel %vm376_vm0, %v783_v9, %v799_v4 }
 0x2cf   :  { %2073 = vmatmul.mubr.msk.f32.vlgmr.msra.gmra.mxu1 %vm808_vm1, %v805_v1 }
 0x2d0   :  { %v797_v10 = vpop.permute.xlu1 %796 }
 0x2d1   :  { %v806_v11 = vsel %vm376_vm0, %v766_v7, %v797_v10 }
 0x2d2   :  { %2075 = vmatprep.mubr.msk.f32.mxu1 %vm808_vm1, %v806_v11 }
 0x2d3   :  { %2076 = vmatmul.mubr.msk.f32.gmra.mxu1 %vm808_vm1, %v807_v13 }
 0x38f   :  { %v2074_v16 = vpop.f32.mrf.mxu1 }
 0x390   :  { %v907_v21 = vmul.f32 %v2074_v16, %v136_v14 }
 0x391   :  { %v887_v24 = vpop.f32.mrf.mxu1 }
 0x392   :  { %v911_v25 = vadd.f32 %v1991_v15, %v907_v21  ;;  %v906_v27 = vmul.f32 %v887_v24, %v135_v20 }
 0x393   :  { %v2077_v28 = vpop.f32.mrf.mxu1 }
 0x394   :  { %v2400_v31 = vmax.f32 %v911_v25, 0.0  ;;  %v910_v32 = vadd.f32 %v1990_v22, %v906_v27  ;;  %v909_v33 = vmul.f32 %v2077_v28, %v136_v14 }
 0x395   :  { %v897_v34 = vpop.f32.mrf.mxu1 }
 0x396   :  { %v913_v35 = vadd.f32 %v1991_v15, %v909_v33  ;;  %v2402_v37 = vmax.f32 %v910_v32, 0.0  ;;  %v908_v40 = vmul.f32 %v897_v34, %v135_v20  ;;  %v995_v41 = vcombine.high %v2400_v31, %v2140_v17 }
 0x397   :  { %v1002_v46 = vrot.slane %v2400_v31, %v2278_v38 }
 0x398   :  { %v2406_v42 = vmax.f32 %v913_v35, 0.0  ;;  %v912_v45 = vadd.f32 %v1990_v22, %v908_v40  ;;  %v929_v49 = vcombine.high %v2402_v37, %v2140_v17  ;;  %v1009_v51 = vrot.slane %v995_v41, %v2278_v38 }
 0x399   :  { %v936_v56 = vrot.slane %v2402_v37, %v2278_v38 }
 0x39a   :  { %v1010_v47 = vcombine.high %v2406_v42, %v2140_v17  ;;  %v1017_v48 = vrot.slane %v2406_v42, %v2278_v38  ;;  %v2416_v5 = vmax.f32 %v912_v45, 0.0  ;;  %v943_v1 = vrot.slane %v929_v49, %v2278_v38 }
 0x39c   :  { %v1024_v52 = vrot.slane %v1010_v47, %v2278_v38  ;;  %v1025_v54 = vcombine.low %v1002_v46, %v1017_v48  ;;  %v1026_v55 = vcombine.high %v1002_v46, %v1017_v48  ;;  %v944_v59 = vcombine.high %v2416_v5, %v2140_v17 }
 0x39d   :  { %v951_v60 = vrot.slane %v2416_v5, %v2278_v38 }
 0x39e   :  { %v1033_v61 = vrot.slane %v1025_v54, %v2181_v6  ;;  %v1040_v62 = vrot.slane %v1026_v55, %v2181_v6  ;;  %v1041_v63 = vcombine.low %v1009_v51, %v1024_v52  ;;  %v1042_v0 = vcombine.high %v1009_v51, %v1024_v52 }
 0x39f   :  { %v958_v3 = vrot.slane %v944_v59, %v2278_v38  ;;  %v959_v4 = vcombine.low %v936_v56, %v951_v60  ;;  %v960_v7 = vcombine.high %v936_v56, %v951_v60 }
 0x3a0   :  { %v1049_v9 = vrot.slane %v1041_v63, %v2181_v6  ;;  %v1056_v10 = vrot.slane %v1042_v0, %v2181_v6  ;;  %v1111_v11 = vcombine.low %v1033_v61, %v1040_v62  ;;  %v2020_v13 = vcombine.high %v1033_v61, %v1040_v62 }
 0x3a1   :  { %v967_v14 = vrot.slane %v959_v4, %v2181_v6  ;;  %v974_v15 = vrot.slane %v960_v7, %v2181_v6  ;;  %v975_v16 = vcombine.low %v943_v1, %v958_v3  ;;  %v976_v20 = vcombine.high %v943_v1, %v958_v3 }
 0x3a2   :  { %v1118_v21 = vrot.slane %v1111_v11, %v2278_v38  ;;  %v1126_v22 = vrot.slane %v2020_v13, %v2278_v38  ;;  %v1127_v24 = vcombine.low %v1049_v9, %v1056_v10  ;;  %v2021_v25 = vcombine.high %v1049_v9, %v1056_v10  ;;  %v2013_v11 = vld [vmem:[%s2613_s2 + $0x38] sm:$0xff]  ;;  %v2012_v13 = vld [vmem:[%s2613_s2 + $0x30] sm:$0xff] }
 0x3a3   :  { %v983_v27 = vrot.slane %v975_v16, %v2181_v6  ;;  %v990_v28 = vrot.slane %v976_v20, %v2181_v6  ;;  %v1061_v32 = vcombine.low %v967_v14, %v974_v15  ;;  %v2018_v33 = vcombine.high %v967_v14, %v974_v15 }
 0x3a4   :  { %v1134_v34 = vrot.slane %v1127_v24, %v2278_v38  ;;  %v1142_v35 = vrot.slane %v2021_v25, %v2278_v38  ;;  %v1143_v40 = vcombine.low %v1118_v21, %v1126_v22 }
 0x3a5   :  { %v1068_v41 = vrot.slane %v1061_v32, %v2278_v38  ;;  %v1076_v45 = vrot.slane %v2018_v33, %v2278_v38  ;;  %v1077_v46 = vcombine.low %v983_v27, %v990_v28  ;;  %v2019_v47 = vcombine.high %v983_v27, %v990_v28 }
 0x3a6   :  { %v1151_v48 = vcombine.low %v1134_v34, %v1142_v35  ;;  %v1150_v54 = vrot.slane %v1143_v40, %v2181_v6 }
 0x3a7   :  { %v1084_v49 = vrot.slane %v1077_v46, %v2278_v38  ;;  %v1092_v51 = vrot.slane %v2019_v47, %v2278_v38  ;;  %v1093_v52 = vcombine.low %v1068_v41, %v1076_v45 }
 0x3a8   :  { %v1158_v55 = vrot.slane %v1151_v48, %v2181_v6 }
 0x3a9   :  { %v1101_v56 = vcombine.low %v1084_v49, %v1092_v51  ;;  %v1100_v61 = vrot.slane %v1093_v52, %v2181_v6  ;;  %v2011_v51 = vld [vmem:[%s2613_s2 + $0x28] sm:$0xff] }
 0x3aa   :  { %v1160_v59 = vcombine.high %v1150_v54, %v1158_v55  ;;  %v1159_v60 = vcombine.low %v1150_v54, %v1158_v55 }
 0x3ab   :  { %v1108_v62 = vrot.slane %v1101_v56, %v2181_v6 }
 0x3ac   :  { %1165 = vrot.lane.b32.xlu1 %v1160_v59, %s2138_s0 }
 0x3ad   :  { %v1110_v63 = vcombine.high %v1100_v61, %v1108_v62  ;;  %v1109_v0 = vcombine.low %v1100_v61, %v1108_v62 }
 0x3af   :  { %1163 = vrot.lane.b32.xlu0 %v1110_v63, %s2138_s0 }
 0x41e   :  { %v1166_v1 = vpop.permute.xlu1 %1165 }
 0x41f   :  { %v1170_v3 = vsel %vm376_vm0, %v1159_v60, %v1166_v1 }
 0x420   :  { %2078 = vmatprep.subr.mxu0 %v1170_v3 }
 0x421   :  { %v1164_v4 = vpop.permute.xlu0 %1163  ;;  %2079 = vmatpush3.msra.mxu0 %v1170_v3 }
 0x422   :  { %v1169_v7 = vsel %vm376_vm0, %v1109_v0, %v1164_v4  ;;  %v2010_v4 = vld [vmem:[%s2613_s2 + $0x20] sm:$0xff] }
 0x423   :  { %2080 = vmatprep.subr.mxu0 %v1169_v7 }
 0x424   :  { %2081 = vmatpush3.msra.mxu0 %v1169_v7 }
 0x425   :  { %2083 = vmatmul.mubr.msk.f32.vlgmr.msra.gmra.mxu0 %vm376_vm0, %v2302_v8  ;;  %2085 = vmatprep.subr.mxu0 %v2013_v11 }
 0x426   :  { %2086 = vmatpush3.msra.mxu0 %v2013_v11 }
 0x427   :  { %2087 = vmatprep.subr.mxu0 %v2012_v13 }
 0x428   :  { %2088 = vmatpush3.msra.mxu0 %v2012_v13 }
 0x429   :  { %2089 = vmatprep.subr.mxu0 %v2011_v51 }
 0x42a   :  { %2090 = vmatpush3.msra.mxu0 %v2011_v51 }
 0x42b   :  { %2091 = vmatprep.subr.mxu0 %v2010_v4 }
 0x42c   :  { %2092 = vmatpush3.msra.mxu0 %v2010_v4 }
 0x4e5   :  { %v2084_v9 = vpop.f32.mrf.mxu0 }
 0x4e6   :  { %1250 = vrot.lane.b32.xlu0 %v2084_v9, %s2132_s17  ;;  %v1320_v8 = vcombine.high %v2084_v9, %v2140_v17  ;;  %v1327_v15 = vrot.slane %v2084_v9, %v2278_v38 }
 0x4e7   :  { %v1237_v10 = vpop.f32.mrf.mxu0 }
 0x4e8   :  { %1248 = vrot.lane.b32.xlu1 %v1237_v10, %s2132_s17  ;;  %v1334_v21 = vrot.slane %v1320_v8, %v2278_v38  ;;  %v1254_v22 = vcombine.high %v1237_v10, %v2140_v17  ;;  %v1261_v33 = vrot.slane %v1237_v10, %v2278_v38 }
 0x4ea   :  { %v1268_v46 = vrot.slane %v1254_v22, %v2278_v38 }
 0x558   :  { %v1251_v14 = vpop.permute.xlu0 %1250 }
 0x559   :  { %v1335_v16 = vcombine.high %v1251_v14, %v2140_v17  ;;  %v1342_v20 = vrot.slane %v1251_v14, %v2278_v38 }
 0x55a   :  { %v1249_v24 = vpop.permute.xlu1 %1248 }
 0x55b   :  { %v1349_v25 = vrot.slane %v1335_v16, %v2278_v38  ;;  %v1350_v27 = vcombine.low %v1327_v15, %v1342_v20  ;;  %v1351_v28 = vcombine.high %v1327_v15, %v1342_v20  ;;  %v1269_v32 = vcombine.high %v1249_v24, %v2140_v17 }
 0x55c   :  { %v1276_v34 = vrot.slane %v1249_v24, %v2278_v38 }
 0x55d   :  { %v1358_v35 = vrot.slane %v1350_v27, %v2181_v6  ;;  %v1365_v40 = vrot.slane %v1351_v28, %v2181_v6  ;;  %v1366_v41 = vcombine.low %v1334_v21, %v1349_v25  ;;  %v1367_v45 = vcombine.high %v1334_v21, %v1349_v25 }
 0x55e   :  { %v1283_v47 = vrot.slane %v1269_v32, %v2278_v38  ;;  %v1284_v48 = vcombine.low %v1261_v33, %v1276_v34  ;;  %v1285_v49 = vcombine.high %v1261_v33, %v1276_v34 }
 0x55f   :  { %v1374_v52 = vrot.slane %v1366_v41, %v2181_v6  ;;  %v1381_v54 = vrot.slane %v1367_v45, %v2181_v6  ;;  %v1436_v55 = vcombine.low %v1358_v35, %v1365_v40  ;;  %v2026_v56 = vcombine.high %v1358_v35, %v1365_v40 }
 0x560   :  { %v1292_v59 = vrot.slane %v1284_v48, %v2181_v6  ;;  %v1299_v60 = vrot.slane %v1285_v49, %v2181_v6  ;;  %v1300_v61 = vcombine.low %v1268_v46, %v1283_v47  ;;  %v1301_v62 = vcombine.high %v1268_v46, %v1283_v47 }
 0x561   :  { %v1443_v63 = vrot.slane %v1436_v55, %v2278_v38  ;;  %v1451_v0 = vrot.slane %v2026_v56, %v2278_v38  ;;  %v1452_v1 = vcombine.low %v1374_v52, %v1381_v54  ;;  %v2027_v3 = vcombine.high %v1374_v52, %v1381_v54 }
 0x562   :  { %v1308_v7 = vrot.slane %v1300_v61, %v2181_v6  ;;  %v1315_v9 = vrot.slane %v1301_v62, %v2181_v6  ;;  %v1386_v10 = vcombine.low %v1292_v59, %v1299_v60  ;;  %v2024_v11 = vcombine.high %v1292_v59, %v1299_v60 }
 0x563   :  { %v1459_v13 = vrot.slane %v1452_v1, %v2278_v38  ;;  %v1467_v8 = vrot.slane %v2027_v3, %v2278_v38  ;;  %v1468_v14 = vcombine.low %v1443_v63, %v1451_v0 }
 0x564   :  { %v1393_v15 = vrot.slane %v1386_v10, %v2278_v38  ;;  %v1401_v16 = vrot.slane %v2024_v11, %v2278_v38  ;;  %v1402_v20 = vcombine.low %v1308_v7, %v1315_v9  ;;  %v2025_v21 = vcombine.high %v1308_v7, %v1315_v9 }
 0x565   :  { %v1476_v22 = vcombine.low %v1459_v13, %v1467_v8  ;;  %v1475_v28 = vrot.slane %v1468_v14, %v2181_v6 }
 0x566   :  { %v1409_v24 = vrot.slane %v1402_v20, %v2278_v38  ;;  %v1417_v25 = vrot.slane %v2025_v21, %v2278_v38  ;;  %v1418_v27 = vcombine.low %v1393_v15, %v1401_v16 }
 0x567   :  { %v1483_v32 = vrot.slane %v1476_v22, %v2181_v6 }
 0x568   :  { %v1426_v33 = vcombine.low %v1409_v24, %v1417_v25  ;;  %v1425_v35 = vrot.slane %v1418_v27, %v2181_v6 }
 0x569   :  { %v1484_v34 = vcombine.low %v1475_v28, %v1483_v32  ;;  %v1485_v45 = vcombine.high %v1475_v28, %v1483_v32 }
 0x56a   :  { %v1433_v40 = vrot.slane %v1426_v33, %v2181_v6 }
 0x56b   :  { %1492 = vrot.lane.b32.xlu0 %v1484_v34, %s2138_s0 }
 0x56c   :  { %v1434_v41 = vcombine.low %v1425_v35, %v1433_v40  ;;  %v1435_v46 = vcombine.high %v1425_v35, %v1433_v40 }
 0x56e   :  { %1490 = vrot.lane.b32.xlu1 %v1434_v41, %s2138_s0 }
 0x56f   :  { %1496 = vrot.lane.b32.xlu0 %v1485_v45, %s2138_s0 }
 0x572   :  { %1494 = vrot.lane.b32.xlu1 %v1435_v46, %s2138_s0 }
 0x5dd   :  { %v1493_v47 = vpop.permute.xlu0 %1492 }
 0x5de   :  { %v1503_v51 = vsel %vm376_vm0, %v2400_v31, %v1493_v47  ;;  %v2015_v31 = vld [vmem:[%s2614_s3 + $0x28] sm:$0xff] }
 0x5e0   :  { %v1491_v48 = vpop.permute.xlu1 %1490 }
 0x5e1   :  { %v1502_v49 = vsel %vm376_vm0, %v2402_v37, %v1491_v48  ;;  %v1497_v52 = vpop.permute.xlu0 %1496  ;;  %v2017_v37 = vld [vmem:[%s2614_s3 + $0x38] sm:$0xff] }
 0x5e2   :  { %2093 = vmatprep.mubr.msk.f32.mxu0 %vm808_vm1, %v1502_v49  ;;  %v1505_v56 = vsel %vm376_vm0, %v2406_v42, %v1497_v52  ;;  %v2016_v42 = vld [vmem:[%s2614_s3 + $0x30] sm:$0xff] }
 0x5e3   :  { %2094 = vmatmul.mubr.msk.f32.vlgmr.msra.gmra.mxu0 %vm808_vm1, %v1503_v51 }
 0x5e4   :  { %v1495_v54 = vpop.permute.xlu1 %1494 }
 0x5e5   :  { %v1504_v55 = vsel %vm376_vm0, %v2416_v5, %v1495_v54  ;;  %v2014_v5 = vld [vmem:[%s2614_s3 + $0x20] sm:$0xff]  ;;  %s2142_s3 = smov [#allocation2]  }
 0x5e6   :  { %2096 = vmatprep.mubr.msk.f32.mxu0 %vm808_vm1, %v1504_v55 }
 0x5e7   :  { %2097 = vmatmul.mubr.msk.f32.gmra.mxu0 %vm808_vm1, %v1505_v56 }
 0x6a3   :  { %v2095_v59 = vpop.f32.mrf.mxu0 }
 0x6a4   :  { %v1604_v60 = vmul.f32 %v2095_v59, %v2015_v31 }
 0x6a5   :  { %v1584_v61 = vpop.f32.mrf.mxu0 }
 0x6a6   :  { %v1608_v62 = vadd.f32 %v2017_v37, %v1604_v60  ;;  %v1603_v63 = vmul.f32 %v2014_v5, %v1584_v61 }
 0x6a7   :  { %v2098_v0 = vpop.f32.mrf.mxu0 }
 0x6a8   :  { %v1612_v1 = vmax.f32 %v1608_v62, 0.0  ;;  %v1607_v3 = vadd.f32 %v2016_v42, %v1603_v63  ;;  %v1606_v4 = vmul.f32 %v2098_v0, %v2015_v31 }
 0x6a9   :  { %v1594_v7 = vpop.f32.mrf.mxu0 }
 0x6aa   :  { %v1611_v9 = vmax.f32 %v1607_v3, 0.0  ;;  %v1610_v10 = vadd.f32 %v2017_v37, %v1606_v4  ;;  %v1643_v11 = vrot.slane %v1612_v1, %v2278_v38  ;;  %v1605_v13 = vmul.f32 %v2014_v5, %v1594_v7 }
 0x6ab   :  { %v1636_v16 = vcombine.high %v1612_v1, %v1612_v1 }
 0x6ac   :  { %v1614_v8 = vmax.f32 %v1610_v10, 0.0  ;;  %v1609_v14 = vadd.f32 %v2016_v42, %v1605_v13  ;;  %v1626_v15 = vrot.slane %v1611_v9, %v2278_v38  ;;  %v1651_v20 = vcombine.high %v1643_v11, %v1643_v11 }
 0x6ad   :  { %v1707_v25 = vadd.f32 %v1643_v11, %v2191_v19  ;;  %v1619_v33 = vcombine.high %v1611_v9, %v1611_v9  ;;  %v1650_v41 = vrot.slane %v1636_v16, %v2278_v38 }
 0x6ae   :  { %v1670_v21 = vcombine.high %v1614_v8, %v1614_v8  ;;  %v1677_v22 = vrot.slane %v1614_v8, %v2278_v38  ;;  %v1613_v24 = vmax.f32 %v1609_v14, 0.0  ;;  %v1634_v34 = vcombine.high %v1626_v15, %v1626_v15 }
 0x6af   :  { %v1708_v45 = vadd.f32 %v1651_v20, %v2207_v30  ;;  %v1703_v48 = vadd.f32 %v1626_v15, %v2184_v12  ;;  %v1633_v55 = vrot.slane %v1619_v33, %v2278_v38  ;;  %v1709_v12 = vadd.f32 %v1650_v41, %v2228_v44 }
 0x6b0   :  { %v1684_v27 = vrot.slane %v1670_v21, %v2278_v38  ;;  %v1685_v28 = vcombine.high %v1677_v22, %v1677_v22  ;;  %v1715_v32 = vadd.f32 %v1677_v22, %v2200_v26  ;;  %v1653_v35 = vcombine.high %v1613_v24, %v1613_v24 }
 0x6b1   :  { %v1660_v40 = vrot.slane %v1613_v24, %v2278_v38  ;;  %v1704_v30 = vadd.f32 %v1634_v34, %v2194_v23  ;;  %v1705_v23 = vadd.f32 %v1633_v55, %v2213_v36  ;;  %v1652_v0 = vcombine.high %v1650_v41, %v1650_v41 }
 0x6b2   :  { %v1716_v46 = vadd.f32 %v1685_v28, %v2219_v39  ;;  %v1755_v47 = vcombine.low %v1707_v25, %v1715_v32  ;;  %v1667_v19 = vrot.slane %v1653_v35, %v2278_v38  ;;  %v1717_v26 = vadd.f32 %v1684_v27, %v2241_v53 }
 0x6b3   :  { %v1668_v49 = vcombine.high %v1660_v40, %v1660_v40  ;;  %v1711_v51 = vadd.f32 %v1660_v40, %v2188_v18  ;;  %v1686_v61 = vcombine.high %v1684_v27, %v1684_v27  ;;  %v1635_v10 = vcombine.high %v1633_v55, %v1633_v55 }
 0x6b4   :  { %v2543_v52 = vrot.slane %v1755_v47, %v2181_v6  ;;  %v1764_v54 = vcombine.low %v1708_v45, %v1716_v46  ;;  %v1713_v18 = vadd.f32 %v1667_v19, %v2225_v43  ;;  %v1773_v60 = vcombine.low %v1709_v12, %v1717_v26 }
 0x6b5   :  { %v1712_v39 = vadd.f32 %v1668_v49, %v2204_v29  ;;  %v1719_v56 = vcombine.low %v1703_v48, %v1711_v51  ;;  %v1669_v36 = vcombine.high %v1667_v19, %v1667_v19  ;;  %v1718_v9 = vadd.f32 %v1686_v61, %v2261_v2 }
 0x6b6   :  { %v1763_v31 = vcombine.high %v2543_v52, %v2140_v17  ;;  %v1771_v5 = vrot.slane %v1764_v54, %v2181_v6  ;;  %v1737_v42 = vcombine.low %v1705_v23, %v1713_v18  ;;  %v1780_v63 = vrot.slane %v1773_v60, %v2181_v6 }
 0x6b7   :  { %v2553_v53 = vrot.slane %v1719_v56, %v2181_v6  ;;  %v1728_v37 = vcombine.low %v1704_v30, %v1712_v39  ;;  %v1710_v11 = vadd.f32 %v1652_v0, %v2250_v58  ;;  %v1714_v14 = vadd.f32 %v1669_v36, %v2247_v57 }
 0x6b8   :  { %v1875_v59 = vrot.slane %v1763_v31, %v2278_v38  ;;  %v1886_v62 = vrot.slane %v1771_v5, %v2278_v38  ;;  %v1744_v3 = vrot.slane %v1737_v42, %v2181_v6  ;;  %v1908_v4 = vrot.slane %v1780_v63, %v2278_v38 }
 0x6b9   :  { %v1727_v29 = vcombine.high %v2553_v53, %v2140_v17  ;;  %v1735_v43 = vrot.slane %v1728_v37, %v2181_v6  ;;  %v1772_v7 = vcombine.high %v1771_v5, %v2140_v17  ;;  %v1781_v16 = vcombine.high %v1780_v63, %v2140_v17 }
 0x6ba   :  { %1876 = vrot.lane.b32.xlu0 %v1875_v59, %s2138_s0  ;;  %v1831_v13 = vrot.slane %v1744_v3, %v2278_v38  ;;  %v1782_v20 = vcombine.low %v1710_v11, %v1718_v9  ;;  %v1706_v2 = vadd.f32 %v1635_v10, %v2235_v50  ;;  %v1745_v58 = vcombine.high %v1744_v3, %v2140_v17 }
 0x6bb   :  { %v1798_v44 = vrot.slane %v1727_v29, %v2278_v38  ;;  %v1809_v1 = vrot.slane %v1735_v43, %v2278_v38  ;;  %v1736_v8 = vcombine.high %v1735_v43, %v2140_v17  ;;  %v1897_v15 = vrot.slane %v1772_v7, %v2278_v38 }
 0x6bc   :  { %v1746_v22 = vcombine.low %v1706_v2, %v1714_v14  ;;  %v1919_v24 = vrot.slane %v1781_v16, %v2278_v38  ;;  %v1789_v57 = vrot.slane %v1782_v20, %v2181_v6  ;;  %v1842_v25 = vrot.slane %v1745_v58, %v2278_v38 }
 0x6bd   :  { %1799 = vrot.lane.b32.xlu1 %v1798_v44, %s2138_s0  ;;  %v1820_v21 = vrot.slane %v1736_v8, %v2278_v38 }
 0x6be   :  { %1887 = vrot.lane.b32.xlu0 %v1886_v62, %s2137_s22  ;;  %v1753_v27 = vrot.slane %v1746_v22, %v2181_v6  ;;  %v1930_v50 = vrot.slane %v1789_v57, %v2278_v38  ;;  %v1790_v28 = vcombine.high %v1789_v57, %v2140_v17 }
 0x6c0   :  { %v1853_v32 = vrot.slane %v1753_v27, %v2278_v38  ;;  %v1754_v33 = vcombine.high %v1753_v27, %v2140_v17  ;;  %v1941_v34 = vrot.slane %v1790_v28, %v2278_v38 }
 0x6c1   :  { %1810 = vrot.lane.b32.xlu1 %v1809_v1, %s2137_s22 }
 0x6c2   :  { %1909 = vrot.lane.b32.xlu0 %v1908_v4, %s2135_s20  ;;  %v1864_v6 = vrot.slane %v1754_v33, %v2278_v38 }
 0x6c5   :  { %1832 = vrot.lane.b32.xlu1 %v1831_v13, %s2135_s20 }
 0x6c6   :  { %1898 = vrot.lane.b32.xlu0 %v1897_v15, %s2136_s21 }
 0x6c9   :  { %1821 = vrot.lane.b32.xlu1 %v1820_v21, %s2136_s21 }
 0x6ca   :  { %1920 = vrot.lane.b32.xlu0 %v1919_v24, %s2133_s18 }
 0x6cd   :  { %1843 = vrot.lane.b32.xlu1 %v1842_v25, %s2133_s18 }
 0x6ce   :  { %1931 = vrot.lane.b32.xlu0 %v1930_v50, %s2134_s19 }
 0x6d1   :  { %1854 = vrot.lane.b32.xlu1 %v1853_v32, %s2134_s19 }
 0x6d2   :  { %1942 = vrot.lane.b32.xlu0 %v1941_v34, %s2132_s17 }
 0x6d5   :  { %1865 = vrot.lane.b32.xlu1 %v1864_v6, %s2132_s17  ;;  %s1982_s17 = sshll.u32 %s2142_s3, 4  ;;  %s1983_s17 = int_to_ptr.vmem [resolvable:$true] %s1982_s17 }
 0x6d6   :  { %s2110_s18 = scalar_lea.vmem %s1983_s17, 64  ;;  %p2115_p1 = scmp.lt.s32.totalorder %s1983_s17, %s1983_s17 }
 0x6d7   :  { %p2111_p0 = scmp.ne.s32.totalorder %s1983_s17, %s2110_s18  ;;  %p2116_p2 = scmp.lt.s32.totalorder %s2110_s18, %s2110_s18 }
 0x6d9   :  { %p2117_p3 = por %p2116_p2, %p2115_p1 }
 0x6db   :  { %p2118_p4 = pnand %p2117_p3, %p2111_p0 }
 0x72c   :  { %v1877_v35 = vpop.permute.xlu0 %1876 }
 0x72d   :  { %v1957_v51 = vsel %vm376_vm0, %v2543_v52, %v1877_v35 }
 0x72f   :  { %v1800_v40 = vpop.permute.xlu1 %1799 }
 0x730   :  { %v1888_v41 = vpop.permute.xlu0 %1887  ;;  %v1945_v26 = vsel %vm376_vm0, %v2553_v53, %v1800_v40 }
 0x731   :  { %v1958_v54 = vsel %vm808_vm1, %v1957_v51, %v1888_v41 }
 0x733   :  { %v1811_v45 = vpop.permute.xlu1 %1810 }
 0x734   :  { %v1910_v46 = vpop.permute.xlu0 %1909  ;;  %v1946_v55 = vsel %vm808_vm1, %v1945_v26, %v1811_v45 }
 0x737   :  { %v1833_v47 = vpop.permute.xlu1 %1832 }
 0x738   :  { %v1899_v48 = vpop.permute.xlu0 %1898 }
 0x739   :  { %v1959_v30 = vsel %vm1947_vm2, %v1958_v54, %v1899_v48 }
 0x73a   :  { %v1960_v12 = vsel %vm1949_vm3, %v1959_v30, %v1910_v46 }
 0x73b   :  { %v1822_v19 = vpop.permute.xlu1 %1821 }
 0x73c   :  { %v1921_v49 = vpop.permute.xlu0 %1920  ;;  %v1948_v39 = vsel %vm1947_vm2, %v1946_v55, %v1822_v19 }
 0x73d   :  { %v1950_v31 = vsel %vm1949_vm3, %v1948_v39, %v1833_v47  ;;  %v1961_v37 = vsel %vm1951_vm4, %v1960_v12, %v1921_v49 }
 0x73f   :  { %v1844_v17 = vpop.permute.xlu1 %1843 }
 0x740   :  { %v1932_v38 = vpop.permute.xlu0 %1931  ;;  %v1952_v52 = vsel %vm1951_vm4, %v1950_v31, %v1844_v17 }
 0x741   :  { %v1962_v53 = vsel %vm1953_vm5, %v1961_v37, %v1932_v38 }
 0x743   :  { %v1855_v56 = vpop.permute.xlu1 %1854 }
 0x744   :  { %v1943_v18 = vpop.permute.xlu0 %1942  ;;  %v1954_v59 = vsel %vm1953_vm5, %v1952_v52, %v1855_v56 }
 0x745   :  { %v1963_v60 = vsel %vm1955_vm6, %v1962_v53, %v1943_v18 }
 0x747   :  { %v1866_v5 = vpop.permute.xlu1 %1865 }
 0x748   :  { %v1956_v23 = vsel %vm1955_vm6, %v1954_v59, %v1866_v5 }
 0x749   :  { %v1966_v29 = vcombine.low %v1956_v23, %v1963_v60 }
 0x74b   :  { %2032 = vst.sshfl [vmem:[#allocation2] sm:$0x33 pattern:$0x76325410] %v1966_v29 }
 0x74c   :  { %2121 = shalt.err (!%p2118_p4)
}
 0x74d   :  { %1985 = dma.vmem_to_hbm [thread:$0]  %s1983_s17, 64, %s2615_s4, [#allocation3]  }
 0x74e   :  { %2130 = dma.done.wait [#allocation3], 64  }
 0x74f   :  { %2131 = vsyncadd [#allocation3], 4294967232 }
 0x750   :  { %1989 = vsyncpa [#allocation3], 1 }

</bundles_post_ra>
